<compile_context>
chip_gen: v6e
topology: v6e:2x2x1
jax: 0.10.0
libtpu: 0.0.40
codegen_flags: <defaults>
</compile_context>

<pallas_src>
import functools

import jax
import jax.numpy as jnp
from jax import lax
from jax.experimental import pallas as pl
from jax.experimental.pallas import tpu as pltpu

# ----------------------------- configuration -------------------------------
B = 2
N = 64                 # number of input points
C_FEAT = 4             # input feature channels
NPOINT = 16            # sampled centers (D-FPS)
RADII = [0.5, 1.0]
NSAMPLES = [8, 16]
MLPS = [[C_FEAT, 8, 16], [C_FEAT, 8, 16]]   # mlp_spec[0] += 3 (use_xyz=True)
AGG_MLP = [32]
CONF_MLP = [32]
NUM_CLASS = 3
BN_EPS = 1e-5


# --------------------------- hardware-aware knobs ---------------------------
def _device_kind():
    try:
        return jax.devices()[0].device_kind.lower()
    except Exception:
        return ""


def _is_v7():
    kind = _device_kind()
    return ("v7" in kind) or ("7x" in kind) or ("tpu7" in kind)


def compute_dtype():
    # bf16 MXU inputs on every TPU generation (v5e MXU consumes bf16 natively);
    # bias / ReLU math stays f32 inside the kernel.
    return jnp.bfloat16


def _num_tensorcores():
    return 2 if _is_v7() else 1


def _vmem_budget_bytes():
    # ~half of physical VMEM: 64 MiB on v7x, 128 MiB on v5e/v6e.
    return (32 << 20) if _is_v7() else (56 << 20)


def _choose_tile_pts(m, bytes_per_point, multi_tc, budget):
    """Points per grid step.  When tiling, tiles must be multiples of 128 points
    (lane-dense, satisfies the (8,128) block rule); otherwise take all M in a
    single step (block == full array)."""
    def fits(t):
        return bytes_per_point * t <= budget
    cands = [d for d in range(128, m, 128) if m % d == 0 and fits(d)]
    if multi_tc and cands:
        return max(cands)            # >= 2 steps -> shard across v7x's 2 TCs
    if fits(m):
        return m                     # single step: no per-step overhead
    return max(cands) if cands else m


# ----------------------------- fused Pallas kernel ---------------------------
def _fused_sa_msg_kernel(nsamples, scale_couts, meta, bias_col, n_shared,
                         n_agg, n_conf, tile_pts, agg_dim, cls_rows, cdtype,
                         g_ref, w_ref, out_ref):
    """One grid step = `tile_pts` center points.
    g_ref:  (Cin, (ns0+ns1+...)*tile_pts) grouped activations, bf16, lane-dense.
    w_ref:  (total_rows, max_cin+1) f32 parameter slab (last column = bias).
    out_ref:(agg_dim + cls_rows, tile_pts) f32 output slab [agg ; cls]."""

    def dense(x, li, relu=True, mxu_dtype=None):
        off, cout, cin = meta[li]
        w = w_ref[off:off + cout, 0:cin]
        b = w_ref[off:off + cout, bias_col:bias_col + 1]          # (cout, 1) f32
        if mxu_dtype is not None:
            w = w.astype(mxu_dtype)
            x = x.astype(mxu_dtype)
        y = jnp.dot(w, x, preferred_element_type=jnp.float32) + b
        return jnp.maximum(y, 0.0) if relu else y

    li = 0
    x = g_ref[...]                                   # (Cin, ns_total*tile_pts)
    for _ in range(n_shared):                        # scale-fused shared MLP
        x = dense(x, li, mxu_dtype=cdtype)
        li += 1

    # Per-scale max-pool over nsample: strided lane slices + elementwise max,
    # merged by a row-index select (each scale owns a disjoint row range).
    c_cat = x.shape[0]
    row_ids = lax.broadcasted_iota(jnp.int32, (c_cat, tile_pts), 0)
    pooled, col, row_off = None, 0, 0
    for s, ns in enumerate(nsamples):
        p = x[:, col:col + tile_pts]
        for j in range(1, ns):
            p = jnp.maximum(p, x[:, col + j * tile_pts:col + (j + 1) * tile_pts])
        pooled = p if pooled is None else jnp.where(row_ids < row_off, pooled, p)
        col += ns * tile_pts
        row_off += scale_couts[s]
    x = pooled                                       # (c_cat, tile_pts) f32

    for _ in range(n_agg):                           # aggregation MLP
        x = dense(x, li, mxu_dtype=cdtype)
        li += 1
    out_ref[0:agg_dim, :] = x.astype(out_ref.dtype)

    y = x
    for _ in range(n_conf):                          # confidence MLP
        y = dense(y, li, mxu_dtype=cdtype)
        li += 1
    # final biased class head: keep f32 for bit-closeness (rows zero-padded)
    y = dense(y, li, relu=False, mxu_dtype=None)
    out_ref[agg_dim:agg_dim + cls_rows, :] = y.astype(out_ref.dtype)


def _pack_param_slab(params, num_class):
    """Fuse scales and pack every (w (cout,cin), b (cout,)) into one f32 slab:
    rows = stacked output channels, cols [0:max_cin] = weights, col max_cin = bias.
    Layer 0 row-stacks per-scale weights (shared Cin); deeper shared-MLP layers
    are block-diagonal, so one matmul per layer serves all scales."""
    scale_layers = params["mlps"]
    n_layers = len(scale_layers[0])
    assert all(len(sl) == n_layers for sl in scale_layers)

    fused = []
    for l in range(n_layers):
        ws = [sl[l][0] for sl in scale_layers]
        bs = [sl[l][1] for sl in scale_layers]
        if l == 0:
            w = jnp.concatenate(ws, axis=0)                      # shared Cin
        else:
            couts = [int(w_.shape[0]) for w_ in ws]
            cins = [int(w_.shape[1]) for w_ in ws]
            w = jnp.zeros((sum(couts), sum(cins)), jnp.float32)
            ro = co = 0
            for w_ in ws:
                w = w.at[ro:ro + w_.shape[0], co:co + w_.shape[1]].set(w_)
                ro += int(w_.shape[0])
                co += int(w_.shape[1])
        fused.append((w, jnp.concatenate(bs, axis=0)))

    wf, bf = params["final"]
    cls_rows = ((num_class + 7) // 8) * 8                        # sublane-aligned
    wf_p = jnp.zeros((cls_rows, wf.shape[1]), jnp.float32).at[:num_class].set(wf)
    bf_p = jnp.zeros((cls_rows,), jnp.float32).at[:num_class].set(bf)

    all_layers = fused + list(params["agg"]) + list(params["conf"]) + [(wf_p, bf_p)]
    max_cin = max(int(w.shape[1]) for w, _ in all_layers)
    total_rows = sum(int(w.shape[0]) for w, _ in all_layers)
    slab = jnp.zeros((total_rows, max_cin + 1), jnp.float32)
    meta, off = [], 0
    for w, b_ in all_layers:
        cout, cin = int(w.shape[0]), int(w.shape[1])
        slab = slab.at[off:off + cout, :cin].set(w)
        slab = slab.at[off:off + cout, max_cin].set(b_)
        meta.append((off, cout, cin))
        off += cout

    info = dict(
        meta=tuple(meta),
        bias_col=max_cin,
        n_shared=n_layers,
        n_agg=len(params["agg"]),
        n_conf=len(params["conf"]),
        scale_couts=tuple(int(sl[-1][0].shape[0]) for sl in scale_layers),
        cls_rows=cls_rows,
    )
    return slab, info


def fused_sa_msg_head(grouped_list, slab, info, *, num_class, cdtype):
    """grouped_list[s]: (Cin, ns_s, M) f32 (channels, samples, points).
    Returns agg (agg_dim, M) and cls (num_class, M) from ONE fused pallas_call."""
    cin = int(grouped_list[0].shape[0])
    M = int(grouped_list[0].shape[2])
    nsamples = tuple(int(g.shape[1]) for g in grouped_list)
    ns_total = sum(nsamples)

    meta, bias_col = info["meta"], info["bias_col"]
    n_shared, n_agg, n_conf = info["n_shared"], info["n_agg"], info["n_conf"]
    scale_couts, cls_rows = info["scale_couts"], info["cls_rows"]
    cat_dim = sum(scale_couts)
    agg_dim = meta[n_shared + n_agg - 1][1] if n_agg else cat_dim
    out_rows = agg_dim + cls_rows

    # generation-aware tile size (points per grid step)
    c_work = max(cat_dim, agg_dim, cin)
    bytes_per_point = (ns_total * (cin * 2 * jnp.dtype(cdtype).itemsize
                                   + c_work * 4 * 2)
                       + out_rows * 4 * 2)
    tile_pts = _choose_tile_pts(M, bytes_per_point, _num_tensorcores() > 1,
                                _vmem_budget_bytes() // 2)
    n_tiles = M // tile_pts
    cols_per_tile = ns_total * tile_pts

    # lane-dense combined grouped slab: per tile, [scale0 | scale1 | ...],
    # each scale sample-major so pooling is a strided lane-slice max.
    blocks = []
    for g in grouped_list:
        ns = int(g.shape[1])
        gb = g.reshape(cin, ns, n_tiles, tile_pts).transpose(0, 2, 1, 3)
        blocks.append(gb.reshape(cin, n_tiles, ns * tile_pts))
    grouped = jnp.concatenate(blocks, axis=2).reshape(cin, n_tiles * cols_per_tile)
    grouped = grouped.astype(cdtype)

    kernel = functools.partial(
        _fused_sa_msg_kernel, nsamples, scale_couts, meta, bias_col,
        n_shared, n_agg, n_conf, tile_pts, agg_dim, cls_rows, cdtype)

    out = pl.pallas_call(
        kernel,
        out_shape=jax.ShapeDtypeStruct((out_rows, M), jnp.float32),
        grid_spec=pltpu.PrefetchScalarGridSpec(
            num_scalar_prefetch=0,
            grid=(n_tiles,),
            in_specs=[pl.BlockSpec((cin, cols_per_tile), lambda i: (0, i)),
                      pl.BlockSpec(slab.shape, lambda i: (0, 0))],
            out_specs=pl.BlockSpec((out_rows, tile_pts), lambda i: (0, i)),
        ),
        compiler_params=pltpu.CompilerParams(
            dimension_semantics=("parallel",),
            vmem_limit_bytes=_vmem_budget_bytes()),
    )(grouped, slab)
    return out[:agg_dim], out[agg_dim:agg_dim + num_class]


# ----------------------------- plain-JAX glue -------------------------------
def farthest_point_sample(xyz, npoint):
    # TODO(synk): sequential D-FPS has no clean Pallas equivalent; plain JAX fori_loop.
    Bb, Np, _ = xyz.shape
    batch = jnp.arange(Bb)

    def body(i, state):
        idxs, dists, last = state
        last_xyz = xyz[batch, last]                       # (B, 3)
        d = jnp.sum((xyz - last_xyz[:, None, :]) ** 2, axis=-1)
        dists = jnp.minimum(dists, d)
        nxt = jnp.argmax(dists, axis=-1).astype(jnp.int32)
        idxs = idxs.at[:, i].set(nxt)
        return idxs, dists, nxt

    idxs = jnp.zeros((Bb, npoint), jnp.int32)             # idx[0] = 0 (matches CUDA FPS)
    dists = jnp.full((Bb, Np), 1e10, jnp.float32)
    last = jnp.zeros((Bb,), jnp.int32)
    idxs, _, _ = lax.fori_loop(1, npoint, body, (idxs, dists, last))
    return idxs


def ball_query(radius, nsample, xyz, new_xyz):
    """CUDA ball_query semantics: first `nsample` in-radius indices in scan
    order; empty slots padded with the first in-radius index; fully-empty
    neighborhoods fall back to index 0 (CUDA zero-init)."""
    _, Np, _ = xyz.shape
    d2 = jnp.sum((new_xyz[:, :, None, :] - xyz[:, None, :, :]) ** 2, axis=-1)  # (B,M,N)
    valid = d2 < radius * radius
    key = jnp.where(valid, jnp.arange(Np, dtype=jnp.int32), jnp.int32(Np))
    neg_key, idx = lax.top_k(-key, nsample)               # O(N*nsample), not a full sort
    idx = idx.astype(jnp.int32)
    sorted_key = -neg_key
    first = jnp.where(sorted_key[..., 0:1] < Np, idx[..., 0:1], 0)
    return jnp.where(sorted_key < Np, idx, first)


def _sample_and_group(xyz, features):
    """Returns new_xyz (B,npoint,3) and per-scale grouped tensors (Cin, ns, B*npoint)."""
    Bb = xyz.shape[0]
    feats_t = jnp.transpose(features, (0, 2, 1))          # (B, N, C)
    batch_idx = jnp.arange(Bb)[:, None, None]

    # sampling: sample_type 'D-FPS', sample_range -1
    sample_idx = farthest_point_sample(xyz, NPOINT)        # (B, npoint)
    new_xyz = xyz[jnp.arange(Bb)[:, None], sample_idx]     # (B, npoint, 3)

    grouped_list = []
    for radius, nsample in zip(RADII, NSAMPLES):
        gidx = ball_query(radius, nsample, xyz, new_xyz)             # (B,npoint,ns)
        g_xyz = xyz[batch_idx, gidx] - new_xyz[:, :, None, :]        # relative coords
        g_feat = feats_t[batch_idx, gidx]
        g = jnp.concatenate([g_xyz, g_feat], axis=-1)                # (B,npoint,ns,3+C)
        g = jnp.transpose(g, (3, 2, 0, 1)).reshape(3 + C_FEAT, nsample, Bb * NPOINT)
        grouped_list.append(g)
    return new_xyz, grouped_list


def pointnet_sa_msg_forward(xyz, features, params, cdtype=jnp.bfloat16):
    """xyz: (B, N, 3); features: (B, C, N).
    Returns (new_xyz (B,npoint,3), new_features (B,Cout,npoint),
             cls_features (B,npoint,num_class))."""
    Bb = xyz.shape[0]
    new_xyz, grouped_list = _sample_and_group(xyz, features)
    slab, info = _pack_param_slab(params, NUM_CLASS)
    agg, cls = fused_sa_msg_head(grouped_list, slab, info,
                                 num_class=NUM_CLASS, cdtype=cdtype)
    new_features = jnp.transpose(agg.reshape(-1, Bb, NPOINT), (1, 0, 2))       # (B,Cout,np)
    cls_features = jnp.transpose(cls.reshape(NUM_CLASS, Bb, NPOINT), (1, 2, 0))  # (B,np,nc)
    return new_xyz, new_features, cls_features


# ----------------------- pure-JAX reference (checking) -----------------------
def _reference_head(grouped_list, params, cdtype):
    def dense(x, w, b, relu=True, cast=True):
        if cast:  # mirror the kernel's bf16 MXU inputs
            w = w.astype(cdtype).astype(jnp.float32)
            x = x.astype(cdtype).astype(jnp.float32)
        y = jnp.einsum("oc,c...->o...", w, x) + b.reshape((-1,) + (1,) * (x.ndim - 1))
        return jnp.maximum(y, 0.0) if relu else y

    pooled = []
    for g, layers in zip(grouped_list, params["mlps"]):
        x = g                                              # (Cin, ns, M)
        for (w, b) in layers:
            x = dense(x, w, b)
        pooled.append(jnp.max(x, axis=1))                  # (Cout, M)
    x = jnp.concatenate(pooled, axis=0)
    for (w, b) in params["agg"]:
        x = dense(x, w, b)
    agg = x
    y = x
    for (w, b) in params["conf"]:
        y = dense(y, w, b)
    wf, bf = params["final"]
    y = dense(y, wf, bf, relu=False, cast=False)
    return agg, y


def reference_forward(xyz, features, params, cdtype=jnp.bfloat16):
    Bb = xyz.shape[0]
    new_xyz, grouped_list = _sample_and_group(xyz, features)
    agg, cls = _reference_head(grouped_list, params, cdtype)
    new_features = jnp.transpose(agg.reshape(-1, Bb, NPOINT), (1, 0, 2))
    cls_features = jnp.transpose(cls.reshape(NUM_CLASS, Bb, NPOINT), (1, 2, 0))
    return new_xyz, new_features, cls_features


# ----------------------------- parameter init -------------------------------
def init_params(key):
    keys = iter(jax.random.split(key, 64))

    def conv_bn(cin, cout):
        """Conv weight (cout, cin) with eval-mode BN folded -> (w*scale, bias)."""
        w = 0.1 * jax.random.normal(next(keys), (cout, cin), jnp.float32)
        gamma = 1.0 + 0.05 * jax.random.normal(next(keys), (cout,), jnp.float32)
        beta = 0.05 * jax.random.normal(next(keys), (cout,), jnp.float32)
        mean = 0.05 * jax.random.normal(next(keys), (cout,), jnp.float32)
        var = jnp.ones((cout,), jnp.float32)
        scale = gamma / jnp.sqrt(var + BN_EPS)
        return (w * scale[:, None], beta - mean * scale)

    params = {"mlps": []}
    for mlp_spec in MLPS:
        spec = [mlp_spec[0] + 3] + mlp_spec[1:]            # use_xyz=True
        params["mlps"].append([conv_bn(ci, co) for ci, co in zip(spec[:-1], spec[1:])])

    out_ch = sum(m[-1] for m in MLPS)
    agg, cin = [], out_ch
    for co in AGG_MLP:
        agg.append(conv_bn(cin, co))
        cin = co
    conf = []
    for co in CONF_MLP:
        conf.append(conv_bn(cin, co))
        cin = co
    wf = 0.1 * jax.random.normal(next(keys), (NUM_CLASS, cin), jnp.float32)
    bf = 0.05 * jax.random.normal(next(keys), (NUM_CLASS,), jnp.float32)
    params["agg"], params["conf"], params["final"] = agg, conf, (wf, bf)
    return params


# ----------------------------------- main -----------------------------------
if __name__ == "__main__":
    key = jax.random.PRNGKey(0)
    kx, kf, kp = jax.random.split(key, 3)
    xyz = jax.random.uniform(kx, (B, N, 3), jnp.float32)
    features = jax.random.normal(kf, (B, C_FEAT, N), jnp.float32)
    params = init_params(kp)
    cdtype = compute_dtype()

    fwd = jax.jit(functools.partial(pointnet_sa_msg_forward, params=params,
                                    cdtype=cdtype))
    new_xyz, new_features, cls_features = fwd(xyz, features)
    jax.block_until_ready((new_xyz, new_features, cls_features))

    assert new_xyz.shape == (B, NPOINT, 3)
    assert new_features.shape == (B, AGG_MLP[-1], NPOINT)
    assert cls_features.shape == (B, NPOINT, NUM_CLASS)

    # cross-check the fused scale-block-diagonal kernel against a plain-JAX head
    ref = jax.jit(functools.partial(reference_forward, params=params,
                                    cdtype=cdtype))
    r_xyz, r_feat, r_cls = ref(xyz, features)
    jax.block_until_ready((r_xyz, r_feat, r_cls))
    assert bool(jnp.allclose(new_xyz, r_xyz))
    assert bool(jnp.allclose(new_features, r_feat, rtol=1e-2, atol=1e-2))
    assert bool(jnp.allclose(cls_features, r_cls, rtol=1e-2, atol=1e-2))

    print("KERNEL_OK")
</pallas_src>

<mosaic_0001>
module attributes {stable_mosaic.version = 11 : i64} {
  func.func @_fused_sa_msg_kernel(%arg0: i32, %arg1: memref<7x768xbf16, #tpu.memory_space<vmem>>, %arg2: memref<120x33xf32, #tpu.memory_space<vmem>>, %arg3: memref<40x32xf32, #tpu.memory_space<vmem>>) attributes {dimension_semantics = [#tpu.dimension_semantics<parallel>], iteration_bounds = array<i64: 1>, scalar_prefetch = 0 : i64, scratch_operands = 0 : i64, tpu.core_type = #tpu.core_type<tc>, window_params = [{transform_indices = @transform_0, window_bounds = array<i64: 7, 768>}, {pipeline_mode = #tpu.pipeline_mode<synchronous>, transform_indices = @transform_1, window_bounds = array<i64: 120, 33>}, {transform_indices = @transform_2, window_bounds = array<i64: 40, 32>}]} {
    %c0 = arith.constant 0 : index
    %c0_0 = arith.constant 0 : index
    %0 = vector.load %arg1[%c0, %c0_0] : memref<7x768xbf16, #tpu.memory_space<vmem>>, vector<7x768xbf16>
    %c0_1 = arith.constant 0 : index
    %c0_2 = arith.constant 0 : index
    %1 = vector.load %arg2[%c0_1, %c0_2] : memref<120x33xf32, #tpu.memory_space<vmem>>, vector<16x7xf32>
    %c0_3 = arith.constant 0 : index
    %c32 = arith.constant 32 : index
    %2 = vector.load %arg2[%c0_3, %c32] : memref<120x33xf32, #tpu.memory_space<vmem>>, vector<16x1xf32>
    %3 = arith.truncf %1 : vector<16x7xf32> to vector<16x7xbf16>
    %cst = arith.constant dense<0.000000e+00> : vector<16x768xf32>
    %4 = tpu.matmul %3, %0, %cst {dimension_numbers = #tpu.dot_dimension_numbers<[1], [0], [0], [1], [0, 0, 1, 1], [], []>} : vector<16x7xbf16>, vector<7x768xbf16>, vector<16x768xf32> -> vector<16x768xf32>
    %5 = vector.broadcast %2 : vector<16x1xf32> to vector<16x768xf32>
    %6 = arith.addf %4, %5 : vector<16x768xf32>
    %cst_4 = arith.constant 0.000000e+00 : f32
    %7 = vector.broadcast %cst_4 : f32 to vector<16x768xf32>
    %8 = arith.maximumf %6, %7 : vector<16x768xf32>
    %c16 = arith.constant 16 : index
    %c0_5 = arith.constant 0 : index
    %9 = vector.load %arg2[%c16, %c0_5] : memref<120x33xf32, #tpu.memory_space<vmem>>, vector<32x16xf32>
    %c16_6 = arith.constant 16 : index
    %c32_7 = arith.constant 32 : index
    %10 = vector.load %arg2[%c16_6, %c32_7] : memref<120x33xf32, #tpu.memory_space<vmem>>, vector<32x1xf32>
    %11 = arith.truncf %9 : vector<32x16xf32> to vector<32x16xbf16>
    %12 = arith.truncf %8 : vector<16x768xf32> to vector<16x768xbf16>
    %cst_8 = arith.constant dense<0.000000e+00> : vector<32x768xf32>
    %13 = tpu.matmul %11, %12, %cst_8 {dimension_numbers = #tpu.dot_dimension_numbers<[1], [0], [0], [1], [0, 0, 1, 1], [], []>} : vector<32x16xbf16>, vector<16x768xbf16>, vector<32x768xf32> -> vector<32x768xf32>
    %14 = vector.broadcast %10 : vector<32x1xf32> to vector<32x768xf32>
    %15 = arith.addf %13, %14 : vector<32x768xf32>
    %cst_9 = arith.constant 0.000000e+00 : f32
    %16 = vector.broadcast %cst_9 : f32 to vector<32x768xf32>
    %17 = arith.maximumf %15, %16 : vector<32x768xf32>
    %18 = tpu.iota {dimensions = array<i32: 0>} : vector<32x32xi32>
    %19 = vector.extract_strided_slice %17 {offsets = [0, 0], sizes = [32, 32], strides = [1, 1]} : vector<32x768xf32> to vector<32x32xf32>
    %20 = vector.extract_strided_slice %17 {offsets = [0, 32], sizes = [32, 32], strides = [1, 1]} : vector<32x768xf32> to vector<32x32xf32>
    %21 = arith.maximumf %19, %20 : vector<32x32xf32>
    %22 = vector.extract_strided_slice %17 {offsets = [0, 64], sizes = [32, 32], strides = [1, 1]} : vector<32x768xf32> to vector<32x32xf32>
    %23 = arith.maximumf %21, %22 : vector<32x32xf32>
    %24 = vector.extract_strided_slice %17 {offsets = [0, 96], sizes = [32, 32], strides = [1, 1]} : vector<32x768xf32> to vector<32x32xf32>
    %25 = arith.maximumf %23, %24 : vector<32x32xf32>
    %26 = vector.extract_strided_slice %17 {offsets = [0, 128], sizes = [32, 32], strides = [1, 1]} : vector<32x768xf32> to vector<32x32xf32>
    %27 = arith.maximumf %25, %26 : vector<32x32xf32>
    %28 = vector.extract_strided_slice %17 {offsets = [0, 160], sizes = [32, 32], strides = [1, 1]} : vector<32x768xf32> to vector<32x32xf32>
    %29 = arith.maximumf %27, %28 : vector<32x32xf32>
    %30 = vector.extract_strided_slice %17 {offsets = [0, 192], sizes = [32, 32], strides = [1, 1]} : vector<32x768xf32> to vector<32x32xf32>
    %31 = arith.maximumf %29, %30 : vector<32x32xf32>
    %32 = vector.extract_strided_slice %17 {offsets = [0, 224], sizes = [32, 32], strides = [1, 1]} : vector<32x768xf32> to vector<32x32xf32>
    %33 = arith.maximumf %31, %32 : vector<32x32xf32>
    %34 = vector.extract_strided_slice %17 {offsets = [0, 256], sizes = [32, 32], strides = [1, 1]} : vector<32x768xf32> to vector<32x32xf32>
    %35 = vector.extract_strided_slice %17 {offsets = [0, 288], sizes = [32, 32], strides = [1, 1]} : vector<32x768xf32> to vector<32x32xf32>
    %36 = arith.maximumf %34, %35 : vector<32x32xf32>
    %37 = vector.extract_strided_slice %17 {offsets = [0, 320], sizes = [32, 32], strides = [1, 1]} : vector<32x768xf32> to vector<32x32xf32>
    %38 = arith.maximumf %36, %37 : vector<32x32xf32>
    %39 = vector.extract_strided_slice %17 {offsets = [0, 352], sizes = [32, 32], strides = [1, 1]} : vector<32x768xf32> to vector<32x32xf32>
    %40 = arith.maximumf %38, %39 : vector<32x32xf32>
    %41 = vector.extract_strided_slice %17 {offsets = [0, 384], sizes = [32, 32], strides = [1, 1]} : vector<32x768xf32> to vector<32x32xf32>
    %42 = arith.maximumf %40, %41 : vector<32x32xf32>
    %43 = vector.extract_strided_slice %17 {offsets = [0, 416], sizes = [32, 32], strides = [1, 1]} : vector<32x768xf32> to vector<32x32xf32>
    %44 = arith.maximumf %42, %43 : vector<32x32xf32>
    %45 = vector.extract_strided_slice %17 {offsets = [0, 448], sizes = [32, 32], strides = [1, 1]} : vector<32x768xf32> to vector<32x32xf32>
    %46 = arith.maximumf %44, %45 : vector<32x32xf32>
    %47 = vector.extract_strided_slice %17 {offsets = [0, 480], sizes = [32, 32], strides = [1, 1]} : vector<32x768xf32> to vector<32x32xf32>
    %48 = arith.maximumf %46, %47 : vector<32x32xf32>
    %49 = vector.extract_strided_slice %17 {offsets = [0, 512], sizes = [32, 32], strides = [1, 1]} : vector<32x768xf32> to vector<32x32xf32>
    %50 = arith.maximumf %48, %49 : vector<32x32xf32>
    %51 = vector.extract_strided_slice %17 {offsets = [0, 544], sizes = [32, 32], strides = [1, 1]} : vector<32x768xf32> to vector<32x32xf32>
    %52 = arith.maximumf %50, %51 : vector<32x32xf32>
    %53 = vector.extract_strided_slice %17 {offsets = [0, 576], sizes = [32, 32], strides = [1, 1]} : vector<32x768xf32> to vector<32x32xf32>
    %54 = arith.maximumf %52, %53 : vector<32x32xf32>
    %55 = vector.extract_strided_slice %17 {offsets = [0, 608], sizes = [32, 32], strides = [1, 1]} : vector<32x768xf32> to vector<32x32xf32>
    %56 = arith.maximumf %54, %55 : vector<32x32xf32>
    %57 = vector.extract_strided_slice %17 {offsets = [0, 640], sizes = [32, 32], strides = [1, 1]} : vector<32x768xf32> to vector<32x32xf32>
    %58 = arith.maximumf %56, %57 : vector<32x32xf32>
    %59 = vector.extract_strided_slice %17 {offsets = [0, 672], sizes = [32, 32], strides = [1, 1]} : vector<32x768xf32> to vector<32x32xf32>
    %60 = arith.maximumf %58, %59 : vector<32x32xf32>
    %61 = vector.extract_strided_slice %17 {offsets = [0, 704], sizes = [32, 32], strides = [1, 1]} : vector<32x768xf32> to vector<32x32xf32>
    %62 = arith.maximumf %60, %61 : vector<32x32xf32>
    %63 = vector.extract_strided_slice %17 {offsets = [0, 736], sizes = [32, 32], strides = [1, 1]} : vector<32x768xf32> to vector<32x32xf32>
    %64 = arith.maximumf %62, %63 : vector<32x32xf32>
    %c16_i32 = arith.constant 16 : i32
    %65 = vector.broadcast %c16_i32 : i32 to vector<32x32xi32>
    %66 = arith.cmpi slt, %18, %65 : vector<32x32xi32>
    %67 = arith.select %66, %33, %64 : vector<32x32xi1>, vector<32x32xf32>
    %c48 = arith.constant 48 : index
    %c0_10 = arith.constant 0 : index
    %68 = vector.load %arg2[%c48, %c0_10] : memref<120x33xf32, #tpu.memory_space<vmem>>, vector<32x32xf32>
    %c48_11 = arith.constant 48 : index
    %c32_12 = arith.constant 32 : index
    %69 = vector.load %arg2[%c48_11, %c32_12] : memref<120x33xf32, #tpu.memory_space<vmem>>, vector<32x1xf32>
    %70 = arith.truncf %68 : vector<32x32xf32> to vector<32x32xbf16>
    %71 = arith.truncf %67 : vector<32x32xf32> to vector<32x32xbf16>
    %cst_13 = arith.constant dense<0.000000e+00> : vector<32x32xf32>
    %72 = tpu.matmul %70, %71, %cst_13 {dimension_numbers = #tpu.dot_dimension_numbers<[1], [0], [0], [1], [0, 0, 1, 1], [], []>} : vector<32x32xbf16>, vector<32x32xbf16>, vector<32x32xf32> -> vector<32x32xf32>
    %73 = vector.broadcast %69 : vector<32x1xf32> to vector<32x32xf32>
    %74 = arith.addf %72, %73 : vector<32x32xf32>
    %cst_14 = arith.constant 0.000000e+00 : f32
    %75 = vector.broadcast %cst_14 : f32 to vector<32x32xf32>
    %76 = arith.maximumf %74, %75 : vector<32x32xf32>
    %c0_15 = arith.constant 0 : index
    %c0_16 = arith.constant 0 : index
    %77 = vector.load %arg3[%c0_15, %c0_16] : memref<40x32xf32, #tpu.memory_space<vmem>>, vector<32x32xf32>
    tpu.vector_store %arg3[%c0_15, %c0_16], %76 {strides = array<i32>} : memref<40x32xf32, #tpu.memory_space<vmem>>, vector<32x32xf32>,
    %c80 = arith.constant 80 : index
    %c0_17 = arith.constant 0 : index
    %78 = vector.load %arg2[%c80, %c0_17] : memref<120x33xf32, #tpu.memory_space<vmem>>, vector<32x32xf32>
    %c80_18 = arith.constant 80 : index
    %c32_19 = arith.constant 32 : index
    %79 = vector.load %arg2[%c80_18, %c32_19] : memref<120x33xf32, #tpu.memory_space<vmem>>, vector<32x1xf32>
    %80 = arith.truncf %78 : vector<32x32xf32> to vector<32x32xbf16>
    %81 = arith.truncf %76 : vector<32x32xf32> to vector<32x32xbf16>
    %cst_20 = arith.constant dense<0.000000e+00> : vector<32x32xf32>
    %82 = tpu.matmul %80, %81, %cst_20 {dimension_numbers = #tpu.dot_dimension_numbers<[1], [0], [0], [1], [0, 0, 1, 1], [], []>} : vector<32x32xbf16>, vector<32x32xbf16>, vector<32x32xf32> -> vector<32x32xf32>
    %83 = vector.broadcast %79 : vector<32x1xf32> to vector<32x32xf32>
    %84 = arith.addf %82, %83 : vector<32x32xf32>
    %cst_21 = arith.constant 0.000000e+00 : f32
    %85 = vector.broadcast %cst_21 : f32 to vector<32x32xf32>
    %86 = arith.maximumf %84, %85 : vector<32x32xf32>
    %c112 = arith.constant 112 : index
    %c0_22 = arith.constant 0 : index
    %87 = vector.load %arg2[%c112, %c0_22] : memref<120x33xf32, #tpu.memory_space<vmem>>, vector<8x32xf32>
    %c112_23 = arith.constant 112 : index
    %c32_24 = arith.constant 32 : index
    %88 = vector.load %arg2[%c112_23, %c32_24] : memref<120x33xf32, #tpu.memory_space<vmem>>, vector<8x1xf32>
    %cst_25 = arith.constant dense<0.000000e+00> : vector<8x32xf32>
    %89 = tpu.matmul %87, %86, %cst_25 {dimension_numbers = #tpu.dot_dimension_numbers<[1], [0], [0], [1], [0, 0, 1, 1], [], []>} : vector<8x32xf32>, vector<32x32xf32>, vector<8x32xf32> -> vector<8x32xf32>
    %90 = vector.broadcast %88 : vector<8x1xf32> to vector<8x32xf32>
    %91 = arith.addf %89, %90 : vector<8x32xf32>
    %c32_26 = arith.constant 32 : index
    %c0_27 = arith.constant 0 : index
    %92 = vector.load %arg3[%c32_26, %c0_27] : memref<40x32xf32, #tpu.memory_space<vmem>>, vector<8x32xf32>
    tpu.vector_store %arg3[%c32_26, %c0_27], %91 {strides = array<i32>} : memref<40x32xf32, #tpu.memory_space<vmem>>, vector<8x32xf32>,
    return
  }
  func.func @transform_0(%arg0: i32) -> (i32, i32) {
    %c0_i32 = arith.constant 0 : i32
    %c0_i32_0 = arith.constant 0 : i32
    return %c0_i32, %arg0 : i32, i32
  }
  func.func @transform_1(%arg0: i32) -> (i32, i32) {
    %c0_i32 = arith.constant 0 : i32
    %c0_i32_0 = arith.constant 0 : i32
    %c0_i32_1 = arith.constant 0 : i32
    return %c0_i32, %c0_i32_0 : i32, i32
  }
  func.func @transform_2(%arg0: i32) -> (i32, i32) {
    %c0_i32 = arith.constant 0 : i32
    %c0_i32_0 = arith.constant 0 : i32
    return %c0_i32, %arg0 : i32, i32
  }
}

</mosaic_0001>

<bundles_post_ra>
// kernel: custom-call.12
= control target key start
LH: loop header
LB: loop body
LE: loop exit
PB: predicated region body
PF: predicated region fallthrough
CT: control target
= control target key end

     0   :  { %s6_s0 = inlined_call_operand.vmem [shape: f32[2,64], index: 0, kind: output, shape index: {}]  }

// kernel: pointnet_sa_msg_forward.1
= control target key start
LH: loop header
LB: loop body
LE: loop exit
PB: predicated region body
PF: predicated region fallthrough
CT: control target
= control target key end

     0   :  { %vm47_vm0 = vcmask 1042432   ;;  %vm48_vm1 = vcmask 1043456   ;;  %v1201_v1 = vmov 65535   ;;  %v1202_v4 = vmov 0   ;;  %s1204_s26 = smov 64   ;;  %s1205_s27 = smov 96   ;;  %s1453_s0 = inlined_call_operand.vmem [shape: bf16[7,768], index: 0, kind: input, shape index: {}]   ;;  %s1454_s1 = inlined_call_operand.vmem [shape: f32[120,33], index: 1, kind: input, shape index: {}]   ;;  %s1455_s2 = inlined_call_operand.vmem [shape: f32[40,32], index: 2, kind: output, shape index: {}]  }
   0x1   :  { %v12_v0 = vld [vmem:[%s1453_s0] sm:$0xff]  ;;  %v49_v2 = vsel %vm47_vm0, 4294967295, %v1201_v1  ;;  %v13_v3 = vld [vmem:[%s1453_s0 + $0x8] sm:$0xff]  ;;  %101 = vmatprep.mubr.bf16.mxu0 %v1202_v4  ;;  %144 = vmatprep.mubr.bf16.mxu1 %v1202_v4  ;;  %v14_v10 = vld [vmem:[%s1453_s0 + $0x10] sm:$0xff]  ;;  %v1203_v11 = vmov 32   ;;  %vm43_vm2 = vcmask 56320  }
   0x2   :  { %v1036_v5 = vcombine.high %v12_v0, %v12_v0  ;;  %v50_v6 = vsel %vm48_vm1, %v49_v2, 0  ;;  %v1038_v7 = vcombine.high %v13_v3, %v13_v3  ;;  %v1035_v8 = vcombine.low %v12_v0, %v12_v0  ;;  %v15_v9 = vld [vmem:[%s1454_s1] sm:$0xff]  ;;  %1103 = vset.pattern.permute.xlu0 %v1203_v11  ;;  %1104 = vset.pattern.permute.xlu1 %v1203_v11  ;;  %v16_v13 = vld [vmem:[%s1454_s1 + $0x8] sm:$0xff]  ;;  %v210_v23 = vld [vmem:[%s1454_s1 + $0x10] sm:$0xff]  ;;  %s1206_s28 = smov 32  }
   0x3   :  { %v1037_v12 = vcombine.low %v13_v3, %v13_v3  ;;  %v1039_v14 = vcombine.low %v14_v10, %v14_v10  ;;  %v1040_v15 = vcombine.high %v14_v10, %v14_v10  ;;  %20 = vperm.xlu0 %1103, %v15_v9   ;;  %v17_v21 = vpack.c.bf16 %v16_v13, %v15_v9  ;;  %v212_v24 = vld [vmem:[%s1454_s1 + $0x20] sm:$0xff]  ;;  %v213_v25 = vld [vmem:[%s1454_s1 + $0x28] sm:$0xff]  ;;  %v211_v27 = vld [vmem:[%s1454_s1 + $0x18] sm:$0xff] }
   0x4   :  { %v55_v16 = vand.u32 %v1036_v5, %v50_v6  ;;  %v61_v17 = vand.u32 %v1038_v7, %v50_v6  ;;  %v52_v18 = vand.u32 %v1035_v8, %v50_v6  ;;  %v1253_v26 = vpack.c.bf16 %v213_v25, %v212_v24  ;;  %234 = vperm.xlu1 %1104, %v212_v24  }
   0x5   :  { %v58_v19 = vand.u32 %v1037_v12, %v50_v6  ;;  %v67_v20 = vand.u32 %v1040_v15, %v50_v6  ;;  %v64_v22 = vand.u32 %v1039_v14, %v50_v6  ;;  %v214_v61 = vpack.c.bf16 %v211_v27, %v210_v23 }
   0x6   :  { %83 = vmatprep.subr.bf16.mxu0 %v55_v16  ;;  %126 = vmatprep.subr.bf16.mxu1 %v61_v17  ;;  %vm242_vm3 = vcmask 130048   ;;  %vm801_vm4 = vcmask 261120   ;;  %vm1208_vm5 = vmmov 0  }
   0x7   :  { %84 = vmatpush1.bf16.msra.mxu0 %v52_v18  ;;  %127 = vmatpush1.bf16.msra.mxu1 %v58_v19 }
   0x8   :  { %169 = vmatprep.subr.bf16.mxu0 %v67_v20  ;;  %25 = vperm.xlu0 %1103, %v16_v13  }
   0x9   :  { %239 = vperm.xlu1 %1104, %v213_v25  }
   0xa   :  { %1041 = vmatmul.mubr.msk.bf16.vlgmr.msra.gmra.mxu0 %vm43_vm2, %v17_v21  ;;  %1042 = vmatmul.mubr.msk.bf16.vlgmr.msra.gmra.mxu1 %vm43_vm2, %v17_v21 }
   0xb   :  { %170 = vmatpush1.bf16.msra.mxu0 %v64_v22  ;;  %187 = vmatprep.mubr.bf16.mxu0 %v1202_v4 }
   0xc   :  { %224 = vperm.xlu0 %1103, %v210_v23   ;;  %281 = vmatprep.mubr.bf16.mxu1 %v1202_v4 }
   0xd   :  { %229 = vperm.xlu1 %1104, %v211_v27  }
  0x12   :  { %1043 = vmatmul.mubr.msk.bf16.vlgmr.msra.gmra.mxu0 %vm43_vm2, %v17_v21 }
  0x13   :  { %334 = vmatprep.mubr.bf16.mxu0 %v1202_v4 }
  0x7e   :  { %v21_v28 = vpop.permute.xlu0 %20 }
  0x7f   :  { %v235_v12 = vpop.permute.xlu1 %234 }
  0x83   :  { %v26_v33 = vpop.permute.xlu0 %25 }
  0x84   :  { %v240_v19 = vpop.permute.xlu1 %239 }
  0x88   :  { %v230_v27 = vpop.permute.xlu1 %229 }
  0xca   :  { %v103_v29 = vpop.f32.mrf.mxu0  ;;  %v146_v30 = vpop.f32.mrf.mxu1 }
  0xcb   :  { %v104_v40 = vadd.f32 %v103_v29, %v21_v28  ;;  %v147_v41 = vadd.f32 %v146_v30, %v21_v28 }
  0xcc   :  { %v105_v31 = vpop.f32.mrf.mxu0  ;;  %v148_v32 = vpop.f32.mrf.mxu1 }
  0xcd   :  { %v106_v36 = vadd.f32 %v105_v31, %v21_v28  ;;  %v149_v37 = vadd.f32 %v148_v32, %v21_v28  ;;  %v198_v53 = vmax.f32 %v104_v40, 0.0  ;;  %v200_v54 = vmax.f32 %v147_v41, 0.0 }
  0xce   :  { %v107_v34 = vpop.f32.mrf.mxu0  ;;  %v150_v35 = vpop.f32.mrf.mxu1 }
  0xcf   :  { %v108_v38 = vadd.f32 %v107_v34, %v26_v33  ;;  %v151_v39 = vadd.f32 %v150_v35, %v26_v33  ;;  %v199_v49 = vmax.f32 %v106_v36, 0.0  ;;  %v201_v50 = vmax.f32 %v149_v37, 0.0 }
  0xd0   :  { %v109_v42 = vpop.f32.mrf.mxu0  ;;  %v152_v43 = vpop.f32.mrf.mxu1 }
  0xd1   :  { %v110_v44 = vadd.f32 %v109_v42, %v26_v33  ;;  %v153_v45 = vadd.f32 %v152_v43, %v26_v33  ;;  %v204_v46 = vmax.f32 %v108_v38, 0.0  ;;  %v206_v47 = vmax.f32 %v151_v39, 0.0  ;;  %v225_v38 = vpop.permute.xlu0 %224 }
  0xd2   :  { %v189_v48 = vpop.f32.mrf.mxu0 }
  0xd3   :  { %v205_v51 = vmax.f32 %v110_v44, 0.0  ;;  %v207_v52 = vmax.f32 %v153_v45, 0.0  ;;  %v216_v58 = vpack.c.bf16 %v204_v46, %v198_v53  ;;  %v218_v59 = vpack.c.bf16 %v206_v47, %v200_v54 }
  0xd4   :  { %v191_v55 = vpop.f32.mrf.mxu0  ;;  %v190_v0 = vadd.f32 %v189_v48, %v21_v28 }
  0xd5   :  { %v217_v56 = vpack.c.bf16 %v205_v51, %v199_v49  ;;  %v219_v57 = vpack.c.bf16 %v207_v52, %v201_v50  ;;  %v192_v62 = vadd.f32 %v191_v55, %v21_v28 }
  0xd6   :  { %v193_v60 = vpop.f32.mrf.mxu0  ;;  %v202_v7 = vmax.f32 %v190_v0, 0.0 }
  0xd7   :  { %v194_v63 = vadd.f32 %v193_v60, %v26_v33  ;;  %263 = vmatprep.subr.bf16.mxu1 %v217_v56  ;;  %316 = vmatprep.subr.bf16.mxu0 %v219_v57  ;;  %v203_v5 = vmax.f32 %v192_v62, 0.0 }
  0xd8   :  { %v195_v1 = vpop.f32.mrf.mxu0  ;;  %264 = vmatpush1.bf16.msra.mxu1 %v216_v58  ;;  %317 = vmatpush1.bf16.msra.mxu0 %v218_v59 }
  0xd9   :  { %v196_v2 = vadd.f32 %v195_v1, %v26_v33  ;;  %v208_v3 = vmax.f32 %v194_v63, 0.0 }
  0xdb   :  { %v209_v6 = vmax.f32 %v196_v2, 0.0  ;;  %1044 = vmatmul.mubr.msk.bf16.vlgmr.msra.gmra.mxu1 %vm242_vm3, %v214_v61  ;;  %1046 = vmatmul.mubr.msk.bf16.vlgmr.msra.gmra.mxu0 %vm242_vm3, %v214_v61  ;;  %v220_v9 = vpack.c.bf16 %v208_v3, %v202_v7  ;;  %v774_v2 = vld [vmem:[%s1454_s1 + $0x38] sm:$0xff]  ;;  %v773_v3 = vld [vmem:[%s1454_s1 + $0x30] sm:$0xff]  ;;  %v1359_v7 = vld [vmem:[%s1454_s1 + $0x48] sm:$0xff] }
  0xdc   :  { %291 = vmatprep.mubr.bf16.mxu1 %v1202_v4  ;;  %344 = vmatprep.mubr.bf16.mxu0 %v1202_v4 }
  0xdd   :  { %v221_v8 = vpack.c.bf16 %v209_v6, %v203_v5  ;;  %v777_v6 = vpack.c.bf16 %v774_v2, %v773_v3 }
  0xdf   :  { %369 = vmatprep.subr.bf16.mxu1 %v221_v8  ;;  %v1364_v8 = vld [vmem:[%s1454_s1 + $0x40] sm:$0xff] }
  0xe0   :  { %370 = vmatpush1.bf16.msra.mxu1 %v220_v9  ;;  %v1371_v9 = vld [vmem:[%s1454_s1 + $0x60] sm:$0xff] }
  0xe3   :  { %1045 = vmatmul.mubr.msk.bf16.gmra.mxu1 %vm242_vm3, %v1253_v26  ;;  %1047 = vmatmul.mubr.msk.bf16.gmra.mxu0 %vm242_vm3, %v1253_v26 }
  0xe4   :  { %387 = vmatprep.mubr.bf16.mxu1 %v1202_v4  ;;  %1072 = vmatprep.mubr.msk.bf16.mxu0 %vm801_vm4, %v777_v6 }
  0xeb   :  { %1048 = vmatmul.mubr.msk.bf16.vlgmr.msra.gmra.mxu1 %vm242_vm3, %v214_v61 }
  0xec   :  { %397 = vmatprep.mubr.bf16.mxu1 %v1202_v4 }
  0xf3   :  { %1049 = vmatmul.mubr.msk.bf16.gmra.mxu1 %vm242_vm3, %v1253_v26 }
 0x19b   :  { %v283_v10 = vpop.f32.mrf.mxu1  ;;  %v336_v11 = vpop.f32.mrf.mxu0 }
 0x19c   :  { %v1288_v40 = vadd.f32 %v283_v10, %v225_v38  ;;  %v1376_v10 = vld [vmem:[%s1454_s1 + $0x68] sm:$0xff]  ;;  %v1383_v11 = vld [vmem:[%s1454_s1 + $0x50] sm:$0xff] }
 0x19d   :  { %v285_v13 = vpop.f32.mrf.mxu1  ;;  %v338_v14 = vpop.f32.mrf.mxu0 }
 0x19e   :  { %v408_v46 = vmax.f32 %v1288_v40, 0.0  ;;  %v1328_v61 = vadd.f32 %v285_v13, %v225_v38  ;;  %v1395_v13 = vld [vmem:[%s1454_s1 + $0x70] sm:$0xff] }
 0x19f   :  { %v287_v15 = vpop.f32.mrf.mxu1  ;;  %v340_v16 = vpop.f32.mrf.mxu0 }
 0x1a0   :  { %v1281_v35 = vadd.f32 %v287_v15, %v230_v27  ;;  %v409_v1 = vmax.f32 %v1328_v61, 0.0 }
 0x1a1   :  { %v289_v17 = vpop.f32.mrf.mxu1  ;;  %v342_v18 = vpop.f32.mrf.mxu0 }
 0x1a2   :  { %v414_v43 = vmax.f32 %v1281_v35, 0.0  ;;  %v1325_v59 = vadd.f32 %v289_v17, %v230_v27 }
 0x1a3   :  { %v293_v20 = vpop.f32.mrf.mxu1  ;;  %v346_v21 = vpop.f32.mrf.mxu0 }
 0x1a4   :  { %v1271_v24 = vadd.f32 %v346_v21, %v235_v12  ;;  %v1120_v48 = vpack.i.bf16 %v414_v43, %v408_v46  ;;  %v415_v63 = vmax.f32 %v1325_v59, 0.0  ;;  %v778_v59 = vpack.c.bf16 %v1359_v7, %v1364_v8 }
 0x1a5   :  { %v295_v22 = vpop.f32.mrf.mxu1  ;;  %v348_v23 = vpop.f32.mrf.mxu0 }
 0x1a6   :  { %v422_v30 = vmax.f32 %v1271_v24, 0.0  ;;  %v1276_v31 = vadd.f32 %v348_v23, %v235_v12  ;;  %v1170_v5 = vpack.i.bf16 %v415_v63, %v409_v1 }
 0x1a7   :  { %v297_v4 = vpop.f32.mrf.mxu1  ;;  %v350_v25 = vpop.f32.mrf.mxu0 }
 0x1a8   :  { %v1273_v26 = vadd.f32 %v350_v25, %v240_v19  ;;  %v423_v41 = vmax.f32 %v1276_v31, 0.0 }
 0x1a9   :  { %v299_v28 = vpop.f32.mrf.mxu1  ;;  %v352_v29 = vpop.f32.mrf.mxu0 }
 0x1aa   :  { %v428_v32 = vmax.f32 %v1273_v26, 0.0  ;;  %v1279_v33 = vadd.f32 %v352_v29, %v240_v19 }
 0x1ab   :  { %v389_v34 = vpop.f32.mrf.mxu1 }
 0x1ac   :  { %v429_v36 = vmax.f32 %v1279_v33, 0.0  ;;  %v1110_v37 = vpack.i.bf16 %v428_v32, %v422_v30 }
 0x1ad   :  { %v391_v39 = vpop.f32.mrf.mxu1 }
 0x1ae   :  { %1111 = vrot.lane.b32.xlu1 %v1110_v37, %s1204_s26  ;;  %1106 = vrot.lane.b32.xlu0 %v1110_v37, %s1205_s27  ;;  %v1125_v44 = vpack.i.bf16 %v429_v36, %v423_v41 }
 0x1af   :  { %v393_v42 = vpop.f32.mrf.mxu1 }
 0x1b1   :  { %v395_v45 = vpop.f32.mrf.mxu1 }
 0x1b2   :  { %1126 = vrot.lane.b32.xlu1 %v1125_v44, %s1205_s27  ;;  %1116 = vrot.lane.b32.xlu0 %v1110_v37, %s1206_s28 }
 0x1b3   :  { %v399_v47 = vpop.f32.mrf.mxu1 }
 0x1b4   :  { %v1305_v50 = vadd.f32 %v399_v47, %v235_v12 }
 0x1b5   :  { %v401_v49 = vpop.f32.mrf.mxu1 }
 0x1b6   :  { %1136 = vrot.lane.b32.xlu1 %v1125_v44, %s1206_s28  ;;  %1121 = vrot.lane.b32.xlu0 %v1120_v48, %s1205_s27  ;;  %v424_v54 = vmax.f32 %v1305_v50, 0.0  ;;  %v1321_v58 = vadd.f32 %v401_v49, %v235_v12  ;;  %v1388_v12 = vld [vmem:[%s1454_s1 + $0x58] sm:$0xff] }
 0x1b7   :  { %v403_v51 = vpop.f32.mrf.mxu1 }
 0x1b8   :  { %v1309_v52 = vadd.f32 %v403_v51, %v240_v19  ;;  %v425_v62 = vmax.f32 %v1321_v58, 0.0 }
 0x1b9   :  { %v405_v53 = vpop.f32.mrf.mxu1 }
 0x1ba   :  { %v430_v55 = vmax.f32 %v1309_v52, 0.0  ;;  %1151 = vrot.lane.b32.xlu1 %v1120_v48, %s1206_s28  ;;  %1131 = vrot.lane.b32.xlu0 %v1125_v44, %s1204_s26  ;;  %v1315_v56 = vadd.f32 %v405_v53, %v240_v19 }
 0x1bc   :  { %v1155_v57 = vpack.i.bf16 %v430_v55, %v424_v54  ;;  %v431_v60 = vmax.f32 %v1315_v56, 0.0 }
 0x1be   :  { %1156 = vrot.lane.b32.xlu1 %v1155_v57, %s1204_s26  ;;  %1141 = vrot.lane.b32.xlu0 %v1155_v57, %s1205_s27  ;;  %v1180_v0 = vpack.i.bf16 %v431_v60, %v425_v62 }
 0x1c2   :  { %1161 = vrot.lane.b32.xlu1 %v1155_v57, %s1206_s28  ;;  %1146 = vrot.lane.b32.xlu0 %v1120_v48, %s1204_s26 }
 0x1c6   :  { %1181 = vrot.lane.b32.xlu1 %v1180_v0, %s1204_s26  ;;  %1166 = vrot.lane.b32.xlu0 %v1180_v0, %s1205_s27 }
 0x1ca   :  { %1186 = vrot.lane.b32.xlu1 %v1180_v0, %s1206_s28  ;;  %1171 = vrot.lane.b32.xlu0 %v1170_v5, %s1205_s27 }
 0x1ce   :  { %1191 = vrot.lane.b32.xlu1 %v1170_v5, %s1206_s28  ;;  %1176 = vrot.lane.b32.xlu0 %v1170_v5, %s1204_s26 }
 0x1d2   :  { %798 = vperm.xlu1 %1104, %v1359_v7   ;;  %793 = vperm.xlu0 %1103, %v1364_v8  }
 0x1d6   :  { %788 = vperm.xlu1 %1104, %v774_v2   ;;  %783 = vperm.xlu0 %1103, %v773_v3  }
 0x1da   :  { %885 = vperm.xlu1 %1104, %v1371_v9   ;;  %890 = vperm.xlu0 %1103, %v1376_v10  }
 0x1de   :  { %875 = vperm.xlu1 %1104, %v1383_v11   ;;  %880 = vperm.xlu0 %1103, %v1388_v12  }
 0x1e2   :  { %955 = vperm.xlu0 %1103, %v1395_v13  }
 0x220   :  { %v1112_v14 = vpop.permute.xlu1 %1111  ;;  %v1107_v15 = vpop.permute.xlu0 %1106 }
 0x221   :  { %v1109_v16 = vunpack.i.h.bf16 %v1107_v15  ;;  %v1108_v17 = vunpack.i.l.bf16 %v1107_v15  ;;  %v1114_v20 = vunpack.i.h.bf16 %v1112_v14  ;;  %v1113_v21 = vunpack.i.l.bf16 %v1112_v14 }
 0x223   :  { %v564_v18 = vmax.f32 %v428_v32, %v1109_v16  ;;  %v563_v19 = vmax.f32 %v422_v30, %v1108_v17 }
 0x224   :  { %v1127_v22 = vpop.permute.xlu1 %1126  ;;  %v1117_v23 = vpop.permute.xlu0 %1116 }
 0x225   :  { %v1119_v4 = vunpack.i.h.bf16 %v1117_v23  ;;  %v1118_v25 = vunpack.i.l.bf16 %v1117_v23  ;;  %v579_v27 = vmax.f32 %v563_v19, %v1113_v21  ;;  %v580_v28 = vmax.f32 %v564_v18, %v1114_v20 }
 0x226   :  { %v1129_v24 = vunpack.i.h.bf16 %v1127_v22  ;;  %v1128_v30 = vunpack.i.l.bf16 %v1127_v22 }
 0x227   :  { %v595_v29 = vmax.f32 %v579_v27, %v1118_v25  ;;  %v596_v34 = vmax.f32 %v580_v28, %v1119_v4 }
 0x228   :  { %v1137_v37 = vpop.permute.xlu1 %1136  ;;  %v1122_v38 = vpop.permute.xlu0 %1121 }
 0x229   :  { %v599_v39 = vmax.f32 %v595_v29, %v423_v41  ;;  %v600_v26 = vmax.f32 %v596_v34, %v429_v36  ;;  %v1139_v49 = vunpack.i.h.bf16 %v1137_v37  ;;  %v1138_v51 = vunpack.i.l.bf16 %v1137_v37 }
 0x22a   :  { %v1124_v41 = vunpack.i.h.bf16 %v1122_v38  ;;  %v1123_v5 = vunpack.i.l.bf16 %v1122_v38 }
 0x22b   :  { %v619_v44 = vmax.f32 %v599_v39, %v1128_v30  ;;  %v620_v45 = vmax.f32 %v600_v26, %v1129_v24 }
 0x22c   :  { %v1152_v32 = vpop.permute.xlu1 %1151  ;;  %v1132_v42 = vpop.permute.xlu0 %1131  ;;  %v454_v21 = vmax.f32 %v414_v43, %v1124_v41  ;;  %v453_v22 = vmax.f32 %v408_v46, %v1123_v5 }
 0x22d   :  { %v1134_v47 = vunpack.i.h.bf16 %v1132_v42  ;;  %v1133_v48 = vunpack.i.l.bf16 %v1132_v42  ;;  %v1154_v38 = vunpack.i.h.bf16 %v1152_v32  ;;  %v1153_v39 = vunpack.i.l.bf16 %v1152_v32 }
 0x22f   :  { %v636_v53 = vmax.f32 %v620_v45, %v1134_v47  ;;  %v635_v57 = vmax.f32 %v619_v44, %v1133_v48 }
 0x230   :  { %v1157_v0 = vpop.permute.xlu1 %1156  ;;  %v1142_v2 = vpop.permute.xlu0 %1141 }
 0x231   :  { %v652_v3 = vmax.f32 %v636_v53, %v1139_v49  ;;  %v651_v31 = vmax.f32 %v635_v57, %v1138_v51  ;;  %v1144_v33 = vunpack.i.h.bf16 %v1142_v2  ;;  %v1143_v36 = vunpack.i.l.bf16 %v1142_v2 }
 0x232   :  { %v1159_v17 = vunpack.i.h.bf16 %v1157_v0  ;;  %v1158_v18 = vunpack.i.l.bf16 %v1157_v0 }
 0x233   :  { %v655_v6 = vmax.f32 %v651_v31, %v424_v54  ;;  %v656_v14 = vmax.f32 %v652_v3, %v430_v55 }
 0x234   :  { %v1162_v15 = vpop.permute.xlu1 %1161  ;;  %v1147_v16 = vpop.permute.xlu0 %1146 }
 0x235   :  { %v675_v19 = vmax.f32 %v655_v6, %v1143_v36  ;;  %v676_v20 = vmax.f32 %v656_v14, %v1144_v33  ;;  %v1149_v23 = vunpack.i.h.bf16 %v1147_v16  ;;  %v1148_v4 = vunpack.i.l.bf16 %v1147_v16 }
 0x236   :  { %v1164_v25 = vunpack.i.h.bf16 %v1162_v15  ;;  %v1163_v50 = vunpack.i.l.bf16 %v1162_v15 }
 0x237   :  { %v691_v54 = vmax.f32 %v675_v19, %v1158_v18  ;;  %v692_v27 = vmax.f32 %v676_v20, %v1159_v17  ;;  %v469_v52 = vmax.f32 %v453_v22, %v1148_v4  ;;  %v470_v55 = vmax.f32 %v454_v21, %v1149_v23 }
 0x238   :  { %v1182_v28 = vpop.permute.xlu1 %1181  ;;  %v1167_v29 = vpop.permute.xlu0 %1166 }
 0x239   :  { %v707_v34 = vmax.f32 %v691_v54, %v1163_v50  ;;  %v708_v37 = vmax.f32 %v692_v27, %v1164_v25  ;;  %v1169_v26 = vunpack.i.h.bf16 %v1167_v29  ;;  %v1168_v35 = vunpack.i.l.bf16 %v1167_v29 }
 0x23a   :  { %v485_v46 = vmax.f32 %v469_v52, %v1153_v39  ;;  %v486_v24 = vmax.f32 %v470_v55, %v1154_v38  ;;  %v1184_v44 = vunpack.i.h.bf16 %v1182_v28  ;;  %v1183_v45 = vunpack.i.l.bf16 %v1182_v28 }
 0x23b   :  { %v711_v40 = vmax.f32 %v707_v34, %v425_v62  ;;  %v712_v43 = vmax.f32 %v708_v37, %v431_v60  ;;  %v870_v29 = vpack.c.bf16 %v1376_v10, %v1371_v9  ;;  %v1207_v34 = vmov 0.0  }
 0x23c   :  { %v1187_v30 = vpop.permute.xlu1 %1186  ;;  %v1172_v42 = vpop.permute.xlu0 %1171  ;;  %v489_v58 = vmax.f32 %v485_v46, %v409_v1  ;;  %v490_v56 = vmax.f32 %v486_v24, %v415_v63  ;;  %v869_v63 = vpack.c.bf16 %v1388_v12, %v1383_v11  ;;  %1084 = vmatprep.subr.mxu1 %v1207_v34  ;;  %1092 = vmatprep.mubr.msk.f32.mxu1 %vm1208_vm5, %v1207_v34 }
 0x23d   :  { %v731_v47 = vmax.f32 %v711_v40, %v1168_v35  ;;  %v732_v48 = vmax.f32 %v712_v43, %v1169_v26  ;;  %v1174_v49 = vunpack.i.h.bf16 %v1172_v42  ;;  %v1173_v51 = vunpack.i.l.bf16 %v1172_v42 }
 0x23e   :  { %v1189_v53 = vunpack.i.h.bf16 %v1187_v30  ;;  %v1188_v32 = vunpack.i.l.bf16 %v1187_v30 }
 0x23f   :  { %v747_v57 = vmax.f32 %v731_v47, %v1183_v45  ;;  %v748_v0 = vmax.f32 %v732_v48, %v1184_v44  ;;  %v509_v31 = vmax.f32 %v489_v58, %v1173_v51  ;;  %v510_v41 = vmax.f32 %v490_v56, %v1174_v49 }
 0x240   :  { %v1177_v60 = vpop.permute.xlu0 %1176  ;;  %v1192_v3 = vpop.permute.xlu1 %1191 }
 0x241   :  { %v763_v62 = vmax.f32 %v747_v57, %v1188_v32  ;;  %v764_v2 = vmax.f32 %v748_v0, %v1189_v53  ;;  %v1179_v5 = vunpack.i.h.bf16 %v1177_v60  ;;  %v1178_v33 = vunpack.i.l.bf16 %v1177_v60 }
 0x242   :  { %v1194_v6 = vunpack.i.h.bf16 %v1192_v3  ;;  %v1193_v14 = vunpack.i.l.bf16 %v1192_v3 }
 0x243   :  { %v780_v36 = vpack.c.bf16 %v764_v2, %v763_v62  ;;  %v525_v15 = vmax.f32 %v509_v31, %v1178_v33  ;;  %v526_v16 = vmax.f32 %v510_v41, %v1179_v5 }
 0x245   :  { %1068 = vmatprep.subr.bf16.mxu0 %v780_v36  ;;  %v541_v17 = vmax.f32 %v525_v15, %v1193_v14  ;;  %v542_v61 = vmax.f32 %v526_v16, %v1194_v6 }
 0x246   :  { %1069 = vmatpush3.bf16.msra.mxu0 %v780_v36 }
 0x247   :  { %v779_v1 = vpack.c.bf16 %v542_v61, %v541_v17 }
 0x249   :  { %1070 = vmatprep.subr.bf16.mxu0 %v779_v1 }
 0x24a   :  { %1071 = vmatpush3.bf16.msra.mxu0 %v779_v1 }
 0x24d   :  { %1073 = vmatmul.mubr.msk.bf16.vlgmr.msra.gmra.mxu0 %vm801_vm4, %v778_v59  ;;  %v794_v18 = vpop.permute.xlu0 %793  ;;  %v799_v19 = vpop.permute.xlu1 %798 }
 0x24e   :  { %1080 = vmatprep.mubr.msk.bf16.mxu0 %vm801_vm4, %v869_v63 }
 0x251   :  { %v784_v22 = vpop.permute.xlu0 %783  ;;  %v789_v11 = vpop.permute.xlu1 %788 }
 0x255   :  { %v891_v37 = vpop.permute.xlu0 %890  ;;  %v886_v39 = vpop.permute.xlu1 %885 }
 0x259   :  { %v881_v46 = vpop.permute.xlu0 %880  ;;  %v876_v44 = vpop.permute.xlu1 %875 }
 0x25d   :  { %v956_v48 = vpop.permute.xlu0 %955 }
 0x30d   :  { %v1074_v20 = vpop.f32.mrf.mxu0 }
 0x30e   :  { %v851_v21 = vadd.f32 %v1074_v20, %v794_v18 }
 0x30f   :  { %v842_v23 = vpop.f32.mrf.mxu0 }
 0x310   :  { %v859_v4 = vmax.f32 %v851_v21, 0.0  ;;  %v843_v25 = vadd.f32 %v842_v23, %v784_v22 }
 0x311   :  { %v1075_v50 = vpop.f32.mrf.mxu0 }
 0x312   :  { %863 = vst.msk [vmem:[%s1455_s2 + $0x10] sm:$0xff] %vm801_vm4, %v859_v4  ;;  %v857_v7 = vmax.f32 %v843_v25, 0.0  ;;  %v854_v8 = vadd.f32 %v1075_v50, %v799_v19 }
 0x313   :  { %v845_v12 = vpop.f32.mrf.mxu0 }
 0x314   :  { %861 = vst.msk [vmem:[%s1455_s2] sm:$0xff] %vm801_vm4, %v857_v7  ;;  %v860_v54 = vmax.f32 %v854_v8, 0.0  ;;  %v846_v27 = vadd.f32 %v845_v12, %v789_v11 }
 0x316   :  { %864 = vst.msk [vmem:[%s1455_s2 + $0x18] sm:$0xff] %vm801_vm4, %v860_v54  ;;  %v872_v52 = vpack.c.bf16 %v860_v54, %v859_v4  ;;  %v858_v55 = vmax.f32 %v846_v27, 0.0 }
 0x318   :  { %862 = vst.msk [vmem:[%s1455_s2 + $0x8] sm:$0xff] %vm801_vm4, %v858_v55  ;;  %v871_v28 = vpack.c.bf16 %v858_v55, %v857_v7  ;;  %1076 = vmatprep.subr.bf16.mxu0 %v872_v52 }
 0x319   :  { %1077 = vmatpush3.bf16.msra.mxu0 %v872_v52 }
 0x31a   :  { %1078 = vmatprep.subr.bf16.mxu0 %v871_v28 }
 0x31d   :  { %1079 = vmatpush3.bf16.msra.mxu0 %v871_v28 }
 0x320   :  { %1081 = vmatmul.mubr.msk.bf16.vlgmr.msra.gmra.mxu0 %vm801_vm4, %v870_v29 }
 0x3e0   :  { %v1082_v38 = vpop.f32.mrf.mxu0 }
 0x3e1   :  { %v942_v40 = vadd.f32 %v1082_v38, %v886_v39 }
 0x3e2   :  { %v933_v26 = vpop.f32.mrf.mxu0 }
 0x3e3   :  { %v950_v9 = vmax.f32 %v942_v40, 0.0  ;;  %v934_v10 = vadd.f32 %v933_v26, %v876_v44 }
 0x3e4   :  { %v1083_v35 = vpop.f32.mrf.mxu0 }
 0x3e5   :  { %v945_v43 = vadd.f32 %v1083_v35, %v891_v37  ;;  %v948_v47 = vmax.f32 %v934_v10, 0.0 }
 0x3e6   :  { %v936_v24 = vpop.f32.mrf.mxu0 }
 0x3e7   :  { %v951_v30 = vmax.f32 %v945_v43, 0.0  ;;  %v937_v42 = vadd.f32 %v936_v24, %v881_v46 }
 0x3e9   :  { %1085 = vmatpush3.msra.mxu1 %v951_v30  ;;  %v949_v45 = vmax.f32 %v937_v42, 0.0 }
 0x3ea   :  { %1086 = vmatprep.subr.mxu1 %v1207_v34 }
 0x3eb   :  { %1087 = vmatpush3.msra.mxu1 %v950_v9 }
 0x3ec   :  { %1088 = vmatprep.subr.mxu1 %v1207_v34 }
 0x3ed   :  { %1089 = vmatpush3.msra.mxu1 %v949_v45 }
 0x3ee   :  { %1090 = vmatprep.subr.mxu1 %v1207_v34 }
 0x3ef   :  { %1091 = vmatpush3.msra.mxu1 %v948_v47 }
 0x3f0   :  { %1093 = vmatmul.mubr.msk.f32.vlgmr.msra.gmra.mxu1 %vm801_vm4, %v1395_v13 }
 0x4b0   :  { %v1026_v49 = vpop.f32.mrf.mxu1 }
 0x4b1   :  { %v1027_v51 = vadd.f32 %v1026_v49, %v956_v48 }
 0x4b2   :  { %v1094_v53 = vpop.f32.mrf.mxu1 }
 0x4b3   :  { %1030 = vst.msk [vmem:[%s1455_s2 + $0x20] sm:$0xff] %vm801_vm4, %v1027_v51 }

</bundles_post_ra>
